<compile_context>
chip_gen: v5e
topology: v5e:2x2
jax: 0.10.0
libtpu: 0.0.40
codegen_flags: <defaults>
</compile_context>

<pallas_src>
import functools

import jax
import jax.numpy as jnp
from jax.experimental import pallas as pl
from jax.experimental.pallas import tpu as pltpu


K_IN = 784          # fc1 contraction dim (28*28)
H1 = 256
H2 = 128
N_OUT = 10
OUT_PAD = 128       # lane-dense padded logits width (unmasked vst)


def _round_up(x, m):
    return ((x + m - 1) // m) * m


def _mlp_kernel(x_ref, w1_ref, b1_ref, w2_ref, b2_ref, w3_ref, b3_ref, o_ref):
    """Fused 3-layer MLP on one batch tile.

    x_ref : (TB, 784)  f32  (streamed straight from HBM, cast to bf16 here)
    w*_ref: bf16 weights in (in, out) layout; w3 lane-padded to (128, 128)
    b*_ref: f32 biases (1, out); b3 padded to (1, 128)
    o_ref : (TB, 128)  bf16 padded logits
    """
    # bf16 cast on the VPU; hidden under the next tile's DMA.
    x = x_ref[...].astype(jnp.bfloat16)                        # (TB, 784)

    # fc1 + ReLU  (bf16 MXU, f32 accumulate, f32 VPU bias/ReLU)
    h1 = jnp.dot(x, w1_ref[...], preferred_element_type=jnp.float32)
    h1 = jnp.maximum(h1 + b1_ref[...], 0.0)                    # (TB, 256) f32

    # fc2 + ReLU
    h2 = jnp.dot(h1.astype(jnp.bfloat16), w2_ref[...],
                 preferred_element_type=jnp.float32)
    h2 = jnp.maximum(h2 + b2_ref[...], 0.0)                    # (TB, 128) f32

    # fc3 (padded logits, no activation); store bf16 to halve writeback bytes.
    logits = jnp.dot(h2.astype(jnp.bfloat16), w3_ref[...],
                     preferred_element_type=jnp.float32)
    o_ref[...] = (logits + b3_ref[...]).astype(o_ref.dtype)    # (TB, 128) bf16


@functools.partial(jax.jit, static_argnames=("block_b",))
def ffnn_forward(x, params, *, block_b=2048):
    """Forward pass. x: (N, 1, 28, 28) or (N, 784); returns (N, 10) f32."""
    w1, b1, w2, b2, w3, b3 = params
    x2d = x.reshape(-1, K_IN).astype(jnp.float32)   # == torch .view(-1, 784); no HBM copy
    n = x2d.shape[0]

    # Balanced batch tiling (no materialized batch padding):
    #  * tiny batches (n <= 8): one full-extent block (block dim == array dim).
    #  * otherwise: >= 2 grid steps (v7x megacore sharding via "parallel"),
    #    balanced tiles rounded up to a multiple of 8 sublanes, partial last
    #    block handled by Pallas (OOB output rows dropped).
    if n <= 8:
        tb = n
    else:
        num_tiles = max(2, pl.cdiv(n, block_b))
        tb = _round_up(pl.cdiv(n, num_tiles), 8)
    grid = (pl.cdiv(n, tb),)

    # ---- operand prep (weights/biases only; x is passed through untouched) ----
    # nn.Linear stores W as (out, in); kernel wants (in, out). Pad fc3 to a
    # lane-dense 128x128 block. Biases stay f32 for the VPU.
    w1t = w1.T.astype(jnp.bfloat16)                                          # (784, 256)
    w2t = w2.T.astype(jnp.bfloat16)                                          # (256, 128)
    w3t = jnp.pad(w3.T, ((0, 0), (0, OUT_PAD - N_OUT))).astype(jnp.bfloat16) # (128, 128)
    b1r = b1.reshape(1, H1).astype(jnp.float32)
    b2r = b2.reshape(1, H2).astype(jnp.float32)
    b3r = jnp.pad(b3.reshape(1, N_OUT).astype(jnp.float32),
                  ((0, 0), (0, OUT_PAD - N_OUT)))                            # (1, 128)

    resident = lambda shape: pl.BlockSpec(shape, lambda i: (0,) * len(shape))

    out_pad = pl.pallas_call(
        _mlp_kernel,
        out_shape=jax.ShapeDtypeStruct((n, OUT_PAD), jnp.bfloat16),
        grid=grid,
        in_specs=[
            pl.BlockSpec((tb, K_IN), lambda i: (i, 0)),       # streamed f32 x tile
            resident((K_IN, H1)), resident((1, H1)),          # fc1
            resident((H1, H2)),   resident((1, H2)),          # fc2
            resident((H2, OUT_PAD)), resident((1, OUT_PAD)),  # fc3 (lane-padded)
        ],
        out_specs=pl.BlockSpec((tb, OUT_PAD), lambda i: (i, 0)),
        compiler_params=pltpu.CompilerParams(
            dimension_semantics=("parallel",),
            vmem_limit_bytes=48 * 1024 * 1024,
        ),
    )(x2d, w1t, b1r, w2t, b2r, w3t, b3r)

    return out_pad[:, :N_OUT].astype(jnp.float32)


def init_params(key):
    """Deterministic parameter init mirroring nn.Linear shapes
    (uniform in [-1/sqrt(fan_in), 1/sqrt(fan_in)], like PyTorch default)."""
    sizes = [(H1, K_IN), (H2, H1), (N_OUT, H2)]
    params = []
    for (out_f, in_f) in sizes:
        key, kw, kb = jax.random.split(key, 3)
        bound = 1.0 / jnp.sqrt(in_f)
        w = jax.random.uniform(kw, (out_f, in_f), jnp.float32, -bound, bound)
        b = jax.random.uniform(kb, (out_f,), jnp.float32, -bound, bound)
        params += [w, b]
    return tuple(params)


def _reference_forward(x, params):
    """Pure-JAX f32 reference for correctness check."""
    w1, b1, w2, b2, w3, b3 = params
    h = x.reshape(-1, K_IN).astype(jnp.float32)
    h = jnp.maximum(h @ w1.T + b1, 0.0)
    h = jnp.maximum(h @ w2.T + b2, 0.0)
    return h @ w3.T + b3


# TODO(synk): train_model / predict_model (Adam optimizer, CrossEntropyLoss,
# data loading) are host-side training utilities with no Pallas equivalent;
# only the forward pass is implemented as a kernel.

if __name__ == "__main__":
    key = jax.random.PRNGKey(0)
    k_param, k_x1, k_x2 = jax.random.split(key, 3)

    params = init_params(k_param)

    # Small MNIST-like batch: 2 images of shape (1, 28, 28), values in [0, 1).
    x = jax.random.uniform(k_x1, (2, 1, 28, 28), jnp.float32)
    out = jax.block_until_ready(ffnn_forward(x, params))
    ref = _reference_forward(x, params)
    assert out.shape == (2, 10)
    # bf16 MXU operands + bf16 logits store -> looser tolerance than pure f32.
    assert jnp.allclose(out, ref, atol=3e-2, rtol=3e-2), "mismatch vs reference (N=2)"

    # Non-multiple-of-8 batch exercises multi-tile grid + partial last block.
    x2 = jax.random.uniform(k_x2, (37, 1, 28, 28), jnp.float32)
    out2 = jax.block_until_ready(ffnn_forward(x2, params))
    ref2 = _reference_forward(x2, params)
    assert out2.shape == (37, 10)
    assert jnp.allclose(out2, ref2, atol=3e-2, rtol=3e-2), "mismatch vs reference (N=37)"

    print("KERNEL_OK")
</pallas_src>

<mosaic_0001>
module attributes {stable_mosaic.version = 11 : i64} {
  func.func @_mlp_kernel(%arg0: i32, %arg1: memref<2x784xf32, #tpu.memory_space<vmem>>, %arg2: memref<784x256xbf16, #tpu.memory_space<vmem>>, %arg3: memref<1x256xf32, #tpu.memory_space<vmem>>, %arg4: memref<256x128xbf16, #tpu.memory_space<vmem>>, %arg5: memref<1x128xf32, #tpu.memory_space<vmem>>, %arg6: memref<128x128xbf16, #tpu.memory_space<vmem>>, %arg7: memref<1x128xf32, #tpu.memory_space<vmem>>, %arg8: memref<2x128xbf16, #tpu.memory_space<vmem>>) attributes {dimension_semantics = [#tpu.dimension_semantics<parallel>], iteration_bounds = array<i64: 1>, scalar_prefetch = 0 : i64, scratch_operands = 0 : i64, tpu.core_type = #tpu.core_type<tc>, window_params = [{transform_indices = @transform_0, window_bounds = array<i64: 2, 784>}, {pipeline_mode = #tpu.pipeline_mode<synchronous>, transform_indices = @transform_1, window_bounds = array<i64: 784, 256>}, {pipeline_mode = #tpu.pipeline_mode<synchronous>, transform_indices = @transform_2, window_bounds = array<i64: 1, 256>}, {pipeline_mode = #tpu.pipeline_mode<synchronous>, transform_indices = @transform_3, window_bounds = array<i64: 256, 128>}, {pipeline_mode = #tpu.pipeline_mode<synchronous>, transform_indices = @transform_4, window_bounds = array<i64: 1, 128>}, {pipeline_mode = #tpu.pipeline_mode<synchronous>, transform_indices = @transform_5, window_bounds = array<i64: 128, 128>}, {pipeline_mode = #tpu.pipeline_mode<synchronous>, transform_indices = @transform_6, window_bounds = array<i64: 1, 128>}, {transform_indices = @transform_7, window_bounds = array<i64: 2, 128>}]} {
    %c0 = arith.constant 0 : index
    %c0_0 = arith.constant 0 : index
    %0 = vector.load %arg1[%c0, %c0_0] : memref<2x784xf32, #tpu.memory_space<vmem>>, vector<2x784xf32>
    %1 = arith.truncf %0 : vector<2x784xf32> to vector<2x784xbf16>
    %c0_1 = arith.constant 0 : index
    %c0_2 = arith.constant 0 : index
    %2 = vector.load %arg2[%c0_1, %c0_2] : memref<784x256xbf16, #tpu.memory_space<vmem>>, vector<784x256xbf16>
    %cst = arith.constant dense<0.000000e+00> : vector<2x256xf32>
    %3 = tpu.matmul %1, %2, %cst {dimension_numbers = #tpu.dot_dimension_numbers<[1], [0], [0], [1], [0, 0, 1, 1], [], []>} : vector<2x784xbf16>, vector<784x256xbf16>, vector<2x256xf32> -> vector<2x256xf32>
    %c0_3 = arith.constant 0 : index
    %c0_4 = arith.constant 0 : index
    %4 = vector.load %arg3[%c0_3, %c0_4] : memref<1x256xf32, #tpu.memory_space<vmem>>, vector<1x256xf32>
    %5 = vector.broadcast %4 : vector<1x256xf32> to vector<2x256xf32>
    %6 = arith.addf %3, %5 : vector<2x256xf32>
    %cst_5 = arith.constant 0.000000e+00 : f32
    %7 = vector.broadcast %cst_5 : f32 to vector<2x256xf32>
    %8 = arith.maximumf %6, %7 : vector<2x256xf32>
    %9 = arith.truncf %8 : vector<2x256xf32> to vector<2x256xbf16>
    %c0_6 = arith.constant 0 : index
    %c0_7 = arith.constant 0 : index
    %10 = vector.load %arg4[%c0_6, %c0_7] : memref<256x128xbf16, #tpu.memory_space<vmem>>, vector<256x128xbf16>
    %cst_8 = arith.constant dense<0.000000e+00> : vector<2x128xf32>
    %11 = tpu.matmul %9, %10, %cst_8 {dimension_numbers = #tpu.dot_dimension_numbers<[1], [0], [0], [1], [0, 0, 1, 1], [], []>} : vector<2x256xbf16>, vector<256x128xbf16>, vector<2x128xf32> -> vector<2x128xf32>
    %c0_9 = arith.constant 0 : index
    %c0_10 = arith.constant 0 : index
    %12 = vector.load %arg5[%c0_9, %c0_10] : memref<1x128xf32, #tpu.memory_space<vmem>>, vector<1x128xf32>
    %13 = vector.broadcast %12 : vector<1x128xf32> to vector<2x128xf32>
    %14 = arith.addf %11, %13 : vector<2x128xf32>
    %cst_11 = arith.constant 0.000000e+00 : f32
    %15 = vector.broadcast %cst_11 : f32 to vector<2x128xf32>
    %16 = arith.maximumf %14, %15 : vector<2x128xf32>
    %17 = arith.truncf %16 : vector<2x128xf32> to vector<2x128xbf16>
    %c0_12 = arith.constant 0 : index
    %c0_13 = arith.constant 0 : index
    %18 = vector.load %arg6[%c0_12, %c0_13] : memref<128x128xbf16, #tpu.memory_space<vmem>>, vector<128x128xbf16>
    %cst_14 = arith.constant dense<0.000000e+00> : vector<2x128xf32>
    %19 = tpu.matmul %17, %18, %cst_14 {dimension_numbers = #tpu.dot_dimension_numbers<[1], [0], [0], [1], [0, 0, 1, 1], [], []>} : vector<2x128xbf16>, vector<128x128xbf16>, vector<2x128xf32> -> vector<2x128xf32>
    %c0_15 = arith.constant 0 : index
    %c0_16 = arith.constant 0 : index
    %20 = vector.load %arg7[%c0_15, %c0_16] : memref<1x128xf32, #tpu.memory_space<vmem>>, vector<1x128xf32>
    %21 = vector.broadcast %20 : vector<1x128xf32> to vector<2x128xf32>
    %22 = arith.addf %19, %21 : vector<2x128xf32>
    %23 = arith.truncf %22 : vector<2x128xf32> to vector<2x128xbf16>
    %c0_17 = arith.constant 0 : index
    %c0_18 = arith.constant 0 : index
    %24 = vector.load %arg8[%c0_17, %c0_18] : memref<2x128xbf16, #tpu.memory_space<vmem>>, vector<2x128xbf16>
    tpu.vector_store %arg8[%c0_17, %c0_18], %23 {strides = array<i32>} : memref<2x128xbf16, #tpu.memory_space<vmem>>, vector<2x128xbf16>,
    return
  }
  func.func @transform_0(%arg0: i32) -> (i32, i32) {
    %c0_i32 = arith.constant 0 : i32
    %c0_i32_0 = arith.constant 0 : i32
    return %arg0, %c0_i32 : i32, i32
  }
  func.func @transform_1(%arg0: i32) -> (i32, i32) {
    %c0_i32 = arith.constant 0 : i32
    %c0_i32_0 = arith.constant 0 : i32
    %c0_i32_1 = arith.constant 0 : i32
    return %c0_i32, %c0_i32_0 : i32, i32
  }
  func.func @transform_2(%arg0: i32) -> (i32, i32) {
    %c0_i32 = arith.constant 0 : i32
    %c0_i32_0 = arith.constant 0 : i32
    %c0_i32_1 = arith.constant 0 : i32
    return %c0_i32, %c0_i32_0 : i32, i32
  }
  func.func @transform_3(%arg0: i32) -> (i32, i32) {
    %c0_i32 = arith.constant 0 : i32
    %c0_i32_0 = arith.constant 0 : i32
    %c0_i32_1 = arith.constant 0 : i32
    return %c0_i32, %c0_i32_0 : i32, i32
  }
  func.func @transform_4(%arg0: i32) -> (i32, i32) {
    %c0_i32 = arith.constant 0 : i32
    %c0_i32_0 = arith.constant 0 : i32
    %c0_i32_1 = arith.constant 0 : i32
    return %c0_i32, %c0_i32_0 : i32, i32
  }
  func.func @transform_5(%arg0: i32) -> (i32, i32) {
    %c0_i32 = arith.constant 0 : i32
    %c0_i32_0 = arith.constant 0 : i32
    %c0_i32_1 = arith.constant 0 : i32
    return %c0_i32, %c0_i32_0 : i32, i32
  }
  func.func @transform_6(%arg0: i32) -> (i32, i32) {
    %c0_i32 = arith.constant 0 : i32
    %c0_i32_0 = arith.constant 0 : i32
    %c0_i32_1 = arith.constant 0 : i32
    return %c0_i32, %c0_i32_0 : i32, i32
  }
  func.func @transform_7(%arg0: i32) -> (i32, i32) {
    %c0_i32 = arith.constant 0 : i32
    %c0_i32_0 = arith.constant 0 : i32
    return %arg0, %c0_i32 : i32, i32
  }
}

</mosaic_0001>

<bundles_post_ra>
// kernel: ffnn_forward.1
= control target key start
LH: loop header
LB: loop body
LE: loop exit
PB: predicated region body
PF: predicated region fallthrough
CT: control target
= control target key end

     0   :  { %vm649_vm0 = vcmask 130048   ;;  %s2448_s1 = inlined_call_operand.vmem [shape: bf16[784,256], index: 1, kind: input, shape index: {}]   ;;  %s2449_s0 = inlined_call_operand.vmem [shape: f32[2,784], index: 0, kind: input, shape index: {}]   ;;  %s2450_s4 = inlined_call_operand.vmem [shape: f32[1,128], index: 4, kind: input, shape index: {}]   ;;  %s2451_s3 = inlined_call_operand.vmem [shape: bf16[256,128], index: 3, kind: input, shape index: {}]   ;;  %s2452_s2 = inlined_call_operand.vmem [shape: f32[1,256], index: 2, kind: input, shape index: {}]   ;;  %s2453_s6 = inlined_call_operand.vmem [shape: f32[1,128], index: 6, kind: input, shape index: {}]   ;;  %s2454_s5 = inlined_call_operand.vmem [shape: bf16[128,128], index: 5, kind: input, shape index: {}]   ;;  %s2455_s7 = inlined_call_operand.vmem [shape: bf16[2,128], index: 7, kind: output, shape index: {}]  }
   0x1   :  { %v1144_v0 = vld [vmem:[%s2448_s1 + $0x70] sm:$0xf]  ;;  %v1591_v1 = vld [vmem:[%s2448_s1 + $0x74] sm:$0xf0]  ;;  %v1136_v11 = vld [vmem:[%s2448_s1 + $0x60] sm:$0xf] }
   0x2   :  { %v1272_v2 = vld [vmem:[%s2448_s1 + $0x170] sm:$0xf]  ;;  %v1145_v3 = vor.u32 %v1591_v1, %v1144_v0  ;;  %v1623_v4 = vld [vmem:[%s2448_s1 + $0x174] sm:$0xf0]  ;;  %v1589_v13 = vld [vmem:[%s2448_s1 + $0x64] sm:$0xf0] }
   0x3   :  { %v1336_v5 = vld [vmem:[%s2448_s1 + $0x1f0] sm:$0xf]  ;;  %v1639_v6 = vld [vmem:[%s2448_s1 + $0x1f4] sm:$0xf0]  ;;  %v1273_v7 = vor.u32 %v1623_v4, %v1272_v2  ;;  %v1264_v14 = vld [vmem:[%s2448_s1 + $0x160] sm:$0xf]  ;;  %v1137_v16 = vor.u32 %v1589_v13, %v1136_v11 }
   0x4   :  { %v1337_v8 = vor.u32 %v1639_v6, %v1336_v5  ;;  %v1208_v9 = vld [vmem:[%s2448_s1 + $0xf0] sm:$0xf]  ;;  %v1607_v10 = vld [vmem:[%s2448_s1 + $0xf4] sm:$0xf0]  ;;  %653 = vmatpush.bf16.msra.mxu0 %v1145_v3  ;;  %v1621_v15 = vld [vmem:[%s2448_s1 + $0x164] sm:$0xf0] }
   0x5   :  { %v1209_v12 = vor.u32 %v1607_v10, %v1208_v9  ;;  %679 = vmatpush.bf16.msra.mxu2 %v1273_v7  ;;  %v1265_v17 = vor.u32 %v1621_v15, %v1264_v14  ;;  %v1328_v18 = vld [vmem:[%s2448_s1 + $0x1e0] sm:$0xf]  ;;  %v1637_v19 = vld [vmem:[%s2448_s1 + $0x1e4] sm:$0xf0]  ;;  %v1128_v23 = vld [vmem:[%s2448_s1 + $0x50] sm:$0xf] }
   0x6   :  { %692 = vmatpush.bf16.msra.mxu3 %v1337_v8  ;;  %v1200_v20 = vld [vmem:[%s2448_s1 + $0xe0] sm:$0xf]  ;;  %v1329_v21 = vor.u32 %v1637_v19, %v1328_v18  ;;  %v1605_v22 = vld [vmem:[%s2448_s1 + $0xe4] sm:$0xf0]  ;;  %v1587_v24 = vld [vmem:[%s2448_s1 + $0x54] sm:$0xf0] }
   0x7   :  { %666 = vmatpush.bf16.msra.mxu1 %v1209_v12  ;;  %v1201_v25 = vor.u32 %v1605_v22, %v1200_v20  ;;  %v1256_v26 = vld [vmem:[%s2448_s1 + $0x150] sm:$0xf]  ;;  %v1619_v27 = vld [vmem:[%s2448_s1 + $0x154] sm:$0xf0]  ;;  %v1129_v29 = vor.u32 %v1587_v24, %v1128_v23  ;;  %v1120_v35 = vld [vmem:[%s2448_s1 + $0x40] sm:$0xf] }
   0x8   :  { %v1320_v28 = vld [vmem:[%s2448_s1 + $0x1d0] sm:$0xf]  ;;  %654 = vmatpush.bf16.msra.mxu0 %v1137_v16  ;;  %v1635_v30 = vld [vmem:[%s2448_s1 + $0x1d4] sm:$0xf0]  ;;  %v1257_v33 = vor.u32 %v1619_v27, %v1256_v26  ;;  %v1585_v36 = vld [vmem:[%s2448_s1 + $0x44] sm:$0xf0] }
   0x9   :  { %v1192_v31 = vld [vmem:[%s2448_s1 + $0xd0] sm:$0xf]  ;;  %v1603_v32 = vld [vmem:[%s2448_s1 + $0xd4] sm:$0xf0]  ;;  %680 = vmatpush.bf16.msra.mxu2 %v1265_v17  ;;  %v1321_v34 = vor.u32 %v1635_v30, %v1320_v28  ;;  %v1248_v37 = vld [vmem:[%s2448_s1 + $0x140] sm:$0xf]  ;;  %v1121_v44 = vor.u32 %v1585_v36, %v1120_v35 }
   0xa   :  { %693 = vmatpush.bf16.msra.mxu3 %v1329_v21  ;;  %v1193_v38 = vor.u32 %v1603_v32, %v1192_v31  ;;  %v1617_v39 = vld [vmem:[%s2448_s1 + $0x144] sm:$0xf0]  ;;  %v1312_v40 = vld [vmem:[%s2448_s1 + $0x1c0] sm:$0xf]  ;;  %v1112_v47 = vld [vmem:[%s2448_s1 + $0x30] sm:$0xf] }
   0xb   :  { %667 = vmatpush.bf16.msra.mxu1 %v1201_v25  ;;  %v1633_v41 = vld [vmem:[%s2448_s1 + $0x1c4] sm:$0xf0]  ;;  %v1184_v42 = vld [vmem:[%s2448_s1 + $0xc0] sm:$0xf]  ;;  %v1249_v45 = vor.u32 %v1617_v39, %v1248_v37  ;;  %v1583_v48 = vld [vmem:[%s2448_s1 + $0x34] sm:$0xf0] }
   0xc   :  { %v1601_v43 = vld [vmem:[%s2448_s1 + $0xc4] sm:$0xf0]  ;;  %655 = vmatpush.bf16.msra.mxu0 %v1129_v29  ;;  %v1313_v46 = vor.u32 %v1633_v41, %v1312_v40  ;;  %v1240_v49 = vld [vmem:[%s2448_s1 + $0x130] sm:$0xf]  ;;  %v1615_v51 = vld [vmem:[%s2448_s1 + $0x134] sm:$0xf0]  ;;  %v1113_v56 = vor.u32 %v1583_v48, %v1112_v47 }
   0xd   :  { %681 = vmatpush.bf16.msra.mxu2 %v1257_v33  ;;  %v1185_v50 = vor.u32 %v1601_v43, %v1184_v42  ;;  %v1304_v52 = vld [vmem:[%s2448_s1 + $0x1b0] sm:$0xf]  ;;  %v1631_v53 = vld [vmem:[%s2448_s1 + $0x1b4] sm:$0xf0]  ;;  %v1241_v57 = vor.u32 %v1615_v51, %v1240_v49  ;;  %v1104_v59 = vld [vmem:[%s2448_s1 + $0x20] sm:$0xf] }
   0xe   :  { %694 = vmatpush.bf16.msra.mxu3 %v1321_v34  ;;  %v1176_v54 = vld [vmem:[%s2448_s1 + $0xb0] sm:$0xf]  ;;  %v1599_v55 = vld [vmem:[%s2448_s1 + $0xb4] sm:$0xf0]  ;;  %v1305_v58 = vor.u32 %v1631_v53, %v1304_v52  ;;  %v1581_v60 = vld [vmem:[%s2448_s1 + $0x24] sm:$0xf0] }
   0xf   :  { %668 = vmatpush.bf16.msra.mxu1 %v1193_v38  ;;  %v1232_v61 = vld [vmem:[%s2448_s1 + $0x120] sm:$0xf]  ;;  %v1177_v62 = vor.u32 %v1599_v55, %v1176_v54  ;;  %v1613_v63 = vld [vmem:[%s2448_s1 + $0x124] sm:$0xf0]  ;;  %v1105_v4 = vor.u32 %v1581_v60, %v1104_v59  ;;  %v1096_v5 = vld [vmem:[%s2448_s1 + $0x10] sm:$0xf] }
  0x10   :  { %656 = vmatpush.bf16.msra.mxu0 %v1121_v44  ;;  %v1296_v0 = vld [vmem:[%s2448_s1 + $0x1a0] sm:$0xf]  ;;  %v1629_v1 = vld [vmem:[%s2448_s1 + $0x1a4] sm:$0xf0]  ;;  %v1579_v6 = vld [vmem:[%s2448_s1 + $0x14] sm:$0xf0]  ;;  %v1233_v7 = vor.u32 %v1613_v63, %v1232_v61 }
  0x11   :  { %682 = vmatpush.bf16.msra.mxu2 %v1249_v45  ;;  %v1168_v2 = vld [vmem:[%s2448_s1 + $0xa0] sm:$0xf]  ;;  %v1597_v3 = vld [vmem:[%s2448_s1 + $0xa4] sm:$0xf0]  ;;  %v1297_v8 = vor.u32 %v1629_v1, %v1296_v0  ;;  %v1224_v9 = vld [vmem:[%s2448_s1 + $0x110] sm:$0xf]  ;;  %v1097_v19 = vor.u32 %v1579_v6, %v1096_v5 }
  0x12   :  { %695 = vmatpush.bf16.msra.mxu3 %v1313_v46  ;;  %v1611_v10 = vld [vmem:[%s2448_s1 + $0x114] sm:$0xf0]  ;;  %v1288_v11 = vld [vmem:[%s2448_s1 + $0x190] sm:$0xf]  ;;  %v1169_v12 = vor.u32 %v1597_v3, %v1168_v2  ;;  %v1088_v16 = vld [vmem:[%s2448_s1] sm:$0xf] }
  0x13   :  { %669 = vmatpush.bf16.msra.mxu1 %v1185_v50  ;;  %v1627_v13 = vld [vmem:[%s2448_s1 + $0x194] sm:$0xf0]  ;;  %v1160_v14 = vld [vmem:[%s2448_s1 + $0x90] sm:$0xf]  ;;  %v1577_v17 = vld [vmem:[%s2448_s1 + $0x4] sm:$0xf0]  ;;  %v1225_v24 = vor.u32 %v1611_v10, %v1224_v9 }
  0x14   :  { %657 = vmatpush.bf16.msra.mxu0 %v1113_v56  ;;  %v1595_v15 = vld [vmem:[%s2448_s1 + $0x94] sm:$0xf0]  ;;  %v27_v18 = vld [vmem:[%s2449_s0] sm:$0xff]  ;;  %v1609_v21 = vld [vmem:[%s2448_s1 + $0x104] sm:$0xf0]  ;;  %v1289_v25 = vor.u32 %v1627_v13, %v1288_v11  ;;  %v1089_v35 = vor.u32 %v1577_v17, %v1088_v16 }
  0x15   :  { %683 = vmatpush.bf16.msra.mxu2 %v1241_v57  ;;  %v1216_v20 = vld [vmem:[%s2448_s1 + $0x100] sm:$0xf]  ;;  %v28_v23 = vld [vmem:[%s2449_s0 + $0x8] sm:$0x3f]  ;;  %31 = vst [vmem:[#allocation1] ss:$4 sm:$0xff] %v27_v18  ;;  %v1161_v28 = vor.u32 %v1595_v15, %v1160_v14 }
  0x16   :  { %696 = vmatpush.bf16.msra.mxu3 %v1305_v58  ;;  %v1280_v22 = vld [vmem:[%s2448_s1 + $0x180] sm:$0xf]  ;;  %v1625_v26 = vld [vmem:[%s2448_s1 + $0x184] sm:$0xf0]  ;;  %v1400_v27 = vld [vmem:[%s2448_s1 + $0x270] sm:$0xf]  ;;  %v1217_v39 = vor.u32 %v1609_v21, %v1216_v20 }
  0x17   :  { %670 = vmatpush.bf16.msra.mxu1 %v1177_v62  ;;  %33 = vst [vmem:[#allocation1 + $0x20] ss:$4 sm:$0xff] %v28_v23  ;;  %v1655_v29 = vld [vmem:[%s2448_s1 + $0x274] sm:$0xf0]  ;;  %v1590_v30 = vld [vmem:[%s2448_s1 + $0x74] sm:$0xf]  ;;  %v1281_v40 = vor.u32 %v1625_v26, %v1280_v22 }
  0x18   :  { %658 = vmatpush.bf16.msra.mxu0 %v1105_v4  ;;  %v1146_v31 = vld [vmem:[%s2448_s1 + $0x78] sm:$0xf0]  ;;  %v1152_v32 = vld [vmem:[%s2448_s1 + $0x80] sm:$0xf]  ;;  %v1593_v33 = vld [vmem:[%s2448_s1 + $0x84] sm:$0xf0]  ;;  %v1401_v44 = vor.u32 %v1655_v29, %v1400_v27 }
  0x19   :  { %684 = vmatpush.bf16.msra.mxu2 %v1233_v7  ;;  %v1464_v34 = vld [vmem:[%s2448_s1 + $0x2f0] sm:$0xf]  ;;  %v1671_v36 = vld [vmem:[%s2448_s1 + $0x2f4] sm:$0xf0]  ;;  %v1472_v37 = vld [vmem:[%s2448_s1 + $0x300] sm:$0xf]  ;;  %v1149_v45 = vor.u32 %v1590_v30, %v1146_v31  ;;  %v1153_v49 = vor.u32 %v1593_v33, %v1152_v32 }
  0x1a   :  { %697 = vmatpush.bf16.msra.mxu3 %v1297_v8  ;;  %v1673_v38 = vld [vmem:[%s2448_s1 + $0x304] sm:$0xf0]  ;;  %v1606_v41 = vld [vmem:[%s2448_s1 + $0xf4] sm:$0xf]  ;;  %v1210_v42 = vld [vmem:[%s2448_s1 + $0xf8] sm:$0xf0]  ;;  %v1465_v54 = vor.u32 %v1671_v36, %v1464_v34 }
  0x1b   :  { %671 = vmatpush.bf16.msra.mxu1 %v1169_v12  ;;  %v1392_v43 = vld [vmem:[%s2448_s1 + $0x260] sm:$0xf]  ;;  %v1653_v46 = vld [vmem:[%s2448_s1 + $0x264] sm:$0xf0]  ;;  %v1588_v47 = vld [vmem:[%s2448_s1 + $0x64] sm:$0xf]  ;;  %v1473_v51 = vor.u32 %v1673_v38, %v1472_v37  ;;  %v1213_v57 = vor.u32 %v1606_v41, %v1210_v42 }
  0x1c   :  { %659 = vmatpush.bf16.msra.mxu0 %v1097_v19  ;;  %v1138_v48 = vld [vmem:[%s2448_s1 + $0x68] sm:$0xf0]  ;;  %v36_v50 = vld.sshfl [vmem:[#allocation1 + $0x10] sm:$0xff pattern:$0x73625140]  ;;  %v1393_v61 = vor.u32 %v1653_v46, %v1392_v43 }
  0x1d   :  { %685 = vmatpush.bf16.msra.mxu2 %v1225_v24  ;;  %v34_v52 = vld.sshfl [vmem:[#allocation1] sm:$0xff pattern:$0x73625140]  ;;  %v1980_v53 = vpack.c.bf16 %v36_v50, %v36_v50  ;;  %v37_v55 = vld.sshfl [vmem:[#allocation1 + $0x18] sm:$0xff pattern:$0x73625140]  ;;  %v1141_v62 = vor.u32 %v1588_v47, %v1138_v48 }
  0x1e   :  { %698 = vmatpush.bf16.msra.mxu3 %v1289_v25  ;;  %v35_v56 = vld.sshfl [vmem:[#allocation1 + $0x8] sm:$0xff pattern:$0x73625140]  ;;  %v1982_v58 = vpack.c.bf16 %v34_v52, %v34_v52  ;;  %v1456_v59 = vld [vmem:[%s2448_s1 + $0x2e0] sm:$0xf]  ;;  %v1999_v2 = vpack.c.bf16 %v37_v55, %v37_v55 }
  0x1f   :  { %672 = vmatpush.bf16.msra.mxu1 %v1161_v28  ;;  %v1669_v60 = vld [vmem:[%s2448_s1 + $0x2e4] sm:$0xf0]  ;;  %v1604_v63 = vld [vmem:[%s2448_s1 + $0xe4] sm:$0xf]  ;;  %v1202_v0 = vld [vmem:[%s2448_s1 + $0xe8] sm:$0xf0]  ;;  %v2001_v3 = vpack.c.bf16 %v35_v56, %v35_v56 }
  0x20   :  { %660 = vmatpush.bf16.msra.mxu0 %v1089_v35  ;;  %v1384_v1 = vld [vmem:[%s2448_s1 + $0x250] sm:$0xf]  ;;  %v1651_v4 = vld [vmem:[%s2448_s1 + $0x254] sm:$0xf0]  ;;  %v1586_v5 = vld [vmem:[%s2448_s1 + $0x54] sm:$0xf]  ;;  %v1457_v7 = vor.u32 %v1669_v60, %v1456_v59  ;;  %v1205_v8 = vor.u32 %v1604_v63, %v1202_v0 }
  0x21   :  { %686 = vmatpush.bf16.msra.mxu2 %v1217_v39  ;;  %v1130_v6 = vld [vmem:[%s2448_s1 + $0x58] sm:$0xf0]  ;;  %v1448_v9 = vld [vmem:[%s2448_s1 + $0x2d0] sm:$0xf]  ;;  %v1667_v10 = vld [vmem:[%s2448_s1 + $0x2d4] sm:$0xf0]  ;;  %v1385_v11 = vor.u32 %v1651_v4, %v1384_v1 }
  0x22   :  { %699 = vmatpush.bf16.msra.mxu3 %v1281_v40  ;;  %v1133_v12 = vor.u32 %v1586_v5, %v1130_v6  ;;  %v1602_v13 = vld [vmem:[%s2448_s1 + $0xd4] sm:$0xf]  ;;  %v1194_v14 = vld [vmem:[%s2448_s1 + $0xd8] sm:$0xf0]  ;;  %v1376_v15 = vld [vmem:[%s2448_s1 + $0x240] sm:$0xf]  ;;  %v1449_v19 = vor.u32 %v1667_v10, %v1448_v9 }
  0x23   :  { %673 = vmatpush.bf16.msra.mxu1 %v1153_v49  ;;  %661 = vmatmul.bf16.vlgmr.msra.gmra.mxu0 %v1982_v58  ;;  %v1649_v16 = vld [vmem:[%s2448_s1 + $0x244] sm:$0xf0]  ;;  %v1584_v17 = vld [vmem:[%s2448_s1 + $0x44] sm:$0xf]  ;;  %v1122_v18 = vld [vmem:[%s2448_s1 + $0x48] sm:$0xf0]  ;;  %v1197_v20 = vor.u32 %v1602_v13, %v1194_v14 }
  0x24   :  { %705 = vmatpush.bf16.msrb.mxu0 %v1401_v44  ;;  %687 = vmatmul.bf16.vlgmr.msra.gmra.mxu2 %v1980_v53  ;;  %v1440_v21 = vld [vmem:[%s2448_s1 + $0x2c0] sm:$0xf]  ;;  %v1665_v22 = vld [vmem:[%s2448_s1 + $0x2c4] sm:$0xf0]  ;;  %v1377_v23 = vor.u32 %v1649_v16, %v1376_v15  ;;  %v1125_v24 = vor.u32 %v1584_v17, %v1122_v18  ;;  %v1600_v25 = vld [vmem:[%s2448_s1 + $0xc4] sm:$0xf] }
  0x25   :  { %738 = vmatpush.bf16.msrb.mxu2 %v1473_v51  ;;  %700 = vmatmul.bf16.vlgmr.msra.gmra.mxu3 %v1999_v2  ;;  %v1186_v26 = vld [vmem:[%s2448_s1 + $0xc8] sm:$0xf0]  ;;  %v1368_v27 = vld [vmem:[%s2448_s1 + $0x230] sm:$0xf]  ;;  %v1647_v28 = vld [vmem:[%s2448_s1 + $0x234] sm:$0xf0]  ;;  %v1441_v31 = vor.u32 %v1665_v22, %v1440_v21 }
  0x26   :  { %744 = vmatpush.bf16.msrb.mxu3 %v1149_v45  ;;  %674 = vmatmul.bf16.vlgmr.msra.gmra.mxu1 %v2001_v3  ;;  %v1582_v29 = vld [vmem:[%s2448_s1 + $0x34] sm:$0xf]  ;;  %v1114_v30 = vld [vmem:[%s2448_s1 + $0x38] sm:$0xf0]  ;;  %v1432_v32 = vld [vmem:[%s2448_s1 + $0x2b0] sm:$0xf]  ;;  %v1189_v33 = vor.u32 %v1600_v25, %v1186_v26  ;;  %v1369_v36 = vor.u32 %v1647_v28, %v1368_v27 }
  0x27   :  { %718 = vmatpush.bf16.msrb.mxu1 %v1465_v54  ;;  %v1663_v34 = vld [vmem:[%s2448_s1 + $0x2b4] sm:$0xf0]  ;;  %v40_v35 = vld.sshfl [vmem:[#allocation1 + $0x30] sm:$0xff pattern:$0x73625140]  ;;  %v1117_v37 = vor.u32 %v1582_v29, %v1114_v30 }
  0x28   :  { %706 = vmatpush.bf16.msrb.mxu0 %v1393_v61  ;;  %v1598_v38 = vld [vmem:[%s2448_s1 + $0xb4] sm:$0xf]  ;;  %v1178_v39 = vld [vmem:[%s2448_s1 + $0xb8] sm:$0xf0]  ;;  %v1360_v40 = vld [vmem:[%s2448_s1 + $0x220] sm:$0xf]  ;;  %v1433_v44 = vor.u32 %v1663_v34, %v1432_v32  ;;  %v2088_v45 = vpack.c.bf16 %v40_v35, %v40_v35 }
  0x29   :  { %757 = vmatpush.bf16.msra.mxu2 %v1213_v57  ;;  %v1645_v41 = vld [vmem:[%s2448_s1 + $0x224] sm:$0xf0]  ;;  %v1580_v42 = vld [vmem:[%s2448_s1 + $0x24] sm:$0xf]  ;;  %v1106_v43 = vld [vmem:[%s2448_s1 + $0x28] sm:$0xf0]  ;;  %v1181_v46 = vor.u32 %v1598_v38, %v1178_v39 }
  0x2a   :  { %745 = vmatpush.bf16.msrb.mxu3 %v1141_v62  ;;  %v1424_v47 = vld [vmem:[%s2448_s1 + $0x2a0] sm:$0xf]  ;;  %v1661_v48 = vld [vmem:[%s2448_s1 + $0x2a4] sm:$0xf0]  ;;  %v1361_v49 = vor.u32 %v1645_v41, %v1360_v40  ;;  %v1109_v50 = vor.u32 %v1580_v42, %v1106_v43  ;;  %v1596_v51 = vld [vmem:[%s2448_s1 + $0xa4] sm:$0xf] }
  0x2b   :  { %719 = vmatpush.bf16.msrb.mxu1 %v1457_v7  ;;  %v1170_v52 = vld [vmem:[%s2448_s1 + $0xa8] sm:$0xf0]  ;;  %v1352_v54 = vld [vmem:[%s2448_s1 + $0x210] sm:$0xf]  ;;  %v1643_v55 = vld [vmem:[%s2448_s1 + $0x214] sm:$0xf0]  ;;  %v1425_v59 = vor.u32 %v1661_v48, %v1424_v47 }
  0x2c   :  { %707 = vmatpush.bf16.msrb.mxu0 %v1385_v11  ;;  %v1578_v56 = vld [vmem:[%s2448_s1 + $0x14] sm:$0xf]  ;;  %v1098_v57 = vld [vmem:[%s2448_s1 + $0x18] sm:$0xf0]  ;;  %v1416_v60 = vld [vmem:[%s2448_s1 + $0x290] sm:$0xf]  ;;  %v1173_v63 = vor.u32 %v1596_v51, %v1170_v52  ;;  %v1353_v5 = vor.u32 %v1643_v55, %v1352_v54 }
  0x2d   :  { %758 = vmatpush.bf16.msra.mxu2 %v1205_v8  ;;  %v1659_v61 = vld [vmem:[%s2448_s1 + $0x294] sm:$0xf0]  ;;  %v1594_v62 = vld [vmem:[%s2448_s1 + $0x94] sm:$0xf]  ;;  %v1162_v0 = vld [vmem:[%s2448_s1 + $0x98] sm:$0xf0]  ;;  %v1101_v6 = vor.u32 %v1578_v56, %v1098_v57 }
  0x2e   :  { %746 = vmatpush.bf16.msrb.mxu3 %v1133_v12  ;;  %v1344_v1 = vld [vmem:[%s2448_s1 + $0x200] sm:$0xf]  ;;  %v1641_v4 = vld [vmem:[%s2448_s1 + $0x204] sm:$0xf0]  ;;  %v1576_v7 = vld [vmem:[%s2448_s1 + $0x4] sm:$0xf]  ;;  %v1417_v13 = vor.u32 %v1659_v61, %v1416_v60  ;;  %v1165_v16 = vor.u32 %v1594_v62, %v1162_v0 }
  0x2f   :  { %720 = vmatpush.bf16.msrb.mxu1 %v1449_v19  ;;  %v1090_v8 = vld [vmem:[%s2448_s1 + $0x8] sm:$0xf0]  ;;  %v1622_v9 = vld [vmem:[%s2448_s1 + $0x174] sm:$0xf]  ;;  %v1274_v10 = vld [vmem:[%s2448_s1 + $0x178] sm:$0xf0] }
  0x30   :  { %708 = vmatpush.bf16.msrb.mxu0 %v1377_v23  ;;  %v1654_v11 = vld [vmem:[%s2448_s1 + $0x274] sm:$0xf]  ;;  %v1402_v12 = vld [vmem:[%s2448_s1 + $0x278] sm:$0xf0]  ;;  %v1408_v14 = vld [vmem:[%s2448_s1 + $0x280] sm:$0xf]  ;;  %v1093_v21 = vor.u32 %v1576_v7, %v1090_v8  ;;  %v1277_v25 = vor.u32 %v1622_v9, %v1274_v10 }
  0x31   :  { %759 = vmatpush.bf16.msra.mxu2 %v1197_v20  ;;  %v38_v15 = vld.sshfl [vmem:[#allocation1 + $0x20] sm:$0xff pattern:$0x73625140]  ;;  %v1657_v17 = vld [vmem:[%s2448_s1 + $0x284] sm:$0xf0]  ;;  %v1345_v20 = vor.u32 %v1641_v4, %v1344_v1  ;;  %v1405_v26 = vor.u32 %v1654_v11, %v1402_v12 }
  0x32   :  { %747 = vmatpush.bf16.msrb.mxu3 %v1125_v24  ;;  %v1592_v18 = vld [vmem:[%s2448_s1 + $0x84] sm:$0xf]  ;;  %v1154_v19 = vld [vmem:[%s2448_s1 + $0x88] sm:$0xf0]  ;;  %v1638_v22 = vld [vmem:[%s2448_s1 + $0x1f4] sm:$0xf]  ;;  %v1409_v29 = vor.u32 %v1657_v17, %v1408_v14  ;;  %v2182_v32 = vpack.c.bf16 %v38_v15, %v38_v15 }
  0x33   :  { %721 = vmatpush.bf16.msrb.mxu1 %v1441_v31  ;;  %v1338_v23 = vld [vmem:[%s2448_s1 + $0x1f8] sm:$0xf0]  ;;  %v1670_v24 = vld [vmem:[%s2448_s1 + $0x2f4] sm:$0xf]  ;;  %v1620_v30 = vld [vmem:[%s2448_s1 + $0x164] sm:$0xf] }
  0x34   :  { %709 = vmatpush.bf16.msrb.mxu0 %v1369_v36  ;;  %1478 = vmatmul.msk.bf16.vlgmr.msrb.gmra.mxu2 %vm649_vm0, %v2088_v45  ;;  %v1466_v27 = vld [vmem:[%s2448_s1 + $0x2f8] sm:$0xf0]  ;;  %v39_v28 = vld.sshfl [vmem:[#allocation1 + $0x28] sm:$0xff pattern:$0x73625140]  ;;  %v1341_v36 = vor.u32 %v1638_v22, %v1338_v23 }
  0x35   :  { %760 = vmatpush.bf16.msra.mxu2 %v1189_v33  ;;  %v1266_v31 = vld [vmem:[%s2448_s1 + $0x168] sm:$0xf0]  ;;  %v1157_v33 = vor.u32 %v1592_v18, %v1154_v19  ;;  %v1652_v34 = vld [vmem:[%s2448_s1 + $0x264] sm:$0xf]  ;;  %v2193_v39 = vpack.c.bf16 %v39_v28, %v39_v28  ;;  %v1258_v47 = vld [vmem:[%s2448_s1 + $0x158] sm:$0xf0] }
  0x36   :  { %748 = vmatpush.bf16.msrb.mxu3 %v1117_v37  ;;  %v1394_v35 = vld [vmem:[%s2448_s1 + $0x268] sm:$0xf0]  ;;  %v1469_v37 = vor.u32 %v1670_v24, %v1466_v27  ;;  %v1636_v38 = vld [vmem:[%s2448_s1 + $0x1e4] sm:$0xf]  ;;  %v1269_v40 = vor.u32 %v1620_v30, %v1266_v31  ;;  %v1650_v48 = vld [vmem:[%s2448_s1 + $0x254] sm:$0xf] }
  0x37   :  { %722 = vmatpush.bf16.msrb.mxu1 %v1433_v44  ;;  %v1330_v41 = vld [vmem:[%s2448_s1 + $0x1e8] sm:$0xf0]  ;;  %v1668_v42 = vld [vmem:[%s2448_s1 + $0x2e4] sm:$0xf]  ;;  %v1397_v44 = vor.u32 %v1652_v34, %v1394_v35  ;;  %v1634_v52 = vld [vmem:[%s2448_s1 + $0x1d4] sm:$0xf] }
  0x38   :  { %710 = vmatpush.bf16.msrb.mxu0 %v1361_v49  ;;  %v1458_v43 = vld [vmem:[%s2448_s1 + $0x2e8] sm:$0xf0]  ;;  %v1386_v49 = vld [vmem:[%s2448_s1 + $0x258] sm:$0xf0]  ;;  %v1666_v56 = vld [vmem:[%s2448_s1 + $0x2d4] sm:$0xf] }
  0x39   :  { %761 = vmatpush.bf16.msra.mxu2 %v1181_v46  ;;  %v1618_v46 = vld [vmem:[%s2448_s1 + $0x154] sm:$0xf]  ;;  %v1461_v51 = vor.u32 %v1668_v42, %v1458_v43  ;;  %v1322_v55 = vld [vmem:[%s2448_s1 + $0x1d8] sm:$0xf0]  ;;  %v1616_v60 = vld [vmem:[%s2448_s1 + $0x144] sm:$0xf] }
  0x3a   :  { %749 = vmatpush.bf16.msrb.mxu3 %v1109_v50  ;;  %v1333_v50 = vor.u32 %v1636_v38, %v1330_v41  ;;  %v1261_v54 = vor.u32 %v1618_v46, %v1258_v47  ;;  %v1450_v57 = vld [vmem:[%s2448_s1 + $0x2d8] sm:$0xf0]  ;;  %v1250_v61 = vld [vmem:[%s2448_s1 + $0x148] sm:$0xf0]  ;;  %v1648_v62 = vld [vmem:[%s2448_s1 + $0x244] sm:$0xf] }
  0x3b   :  { %723 = vmatpush.bf16.msrb.mxu1 %v1425_v59  ;;  %v1389_v59 = vor.u32 %v1650_v48, %v1386_v49  ;;  %v1453_v0 = vor.u32 %v1666_v56, %v1450_v57  ;;  %v1632_v1 = vld [vmem:[%s2448_s1 + $0x1c4] sm:$0xf]  ;;  %v1253_v4 = vor.u32 %v1616_v60, %v1250_v61  ;;  %v1614_v8 = vld [vmem:[%s2448_s1 + $0x134] sm:$0xf]  ;;  %v1242_v9 = vld [vmem:[%s2448_s1 + $0x138] sm:$0xf0] }
  0x3c   :  { %711 = vmatpush.bf16.msrb.mxu0 %v1353_v5  ;;  %v1314_v5 = vld [vmem:[%s2448_s1 + $0x1c8] sm:$0xf0]  ;;  %v1646_v10 = vld [vmem:[%s2448_s1 + $0x234] sm:$0xf]  ;;  %v1370_v11 = vld [vmem:[%s2448_s1 + $0x238] sm:$0xf0]  ;;  %v1245_v15 = vor.u32 %v1614_v8, %v1242_v9 }
  0x3d   :  { %762 = vmatpush.bf16.msra.mxu2 %v1173_v63  ;;  %v1378_v63 = vld [vmem:[%s2448_s1 + $0x248] sm:$0xf0]  ;;  %v1317_v12 = vor.u32 %v1632_v1, %v1314_v5  ;;  %v1630_v14 = vld [vmem:[%s2448_s1 + $0x1b4] sm:$0xf]  ;;  %v1434_v18 = vld [vmem:[%s2448_s1 + $0x2b8] sm:$0xf0]  ;;  %v1373_v19 = vor.u32 %v1646_v10, %v1370_v11 }
  0x3e   :  { %750 = vmatpush.bf16.msrb.mxu3 %v1101_v6  ;;  %v1664_v6 = vld [vmem:[%s2448_s1 + $0x2c4] sm:$0xf]  ;;  %v1381_v7 = vor.u32 %v1648_v62, %v1378_v63  ;;  %v1662_v17 = vld [vmem:[%s2448_s1 + $0x2b4] sm:$0xf]  ;;  %v1362_v23 = vld [vmem:[%s2448_s1 + $0x228] sm:$0xf0] }
  0x3f   :  { %724 = vmatpush.bf16.msrb.mxu1 %v1417_v13  ;;  %v1644_v22 = vld [vmem:[%s2448_s1 + $0x224] sm:$0xf]  ;;  %v1298_v28 = vld [vmem:[%s2448_s1 + $0x1a8] sm:$0xf0]  ;;  %v1226_v34 = vld [vmem:[%s2448_s1 + $0x118] sm:$0xf0] }
  0x40   :  { %712 = vmatpush.bf16.msrb.mxu0 %v1345_v20  ;;  %v1612_v20 = vld [vmem:[%s2448_s1 + $0x124] sm:$0xf]  ;;  %v1426_v30 = vld [vmem:[%s2448_s1 + $0x2a8] sm:$0xf0]  ;;  %v1365_v31 = vor.u32 %v1644_v22, %v1362_v23  ;;  %v1642_v35 = vld [vmem:[%s2448_s1 + $0x214] sm:$0xf] }
  0x41   :  { %763 = vmatpush.bf16.msra.mxu2 %v1165_v16  ;;  %v1306_v16 = vld [vmem:[%s2448_s1 + $0x1b8] sm:$0xf0]  ;;  %v1658_v43 = vld [vmem:[%s2448_s1 + $0x294] sm:$0xf]  ;;  %v1608_v47 = vld [vmem:[%s2448_s1 + $0x104] sm:$0xf] }
  0x42   :  { %751 = vmatpush.bf16.msrb.mxu3 %v1093_v21  ;;  %v1234_v21 = vld [vmem:[%s2448_s1 + $0x128] sm:$0xf0]  ;;  %v1309_v24 = vor.u32 %v1630_v14, %v1306_v16  ;;  %v1290_v42 = vld [vmem:[%s2448_s1 + $0x198] sm:$0xf0]  ;;  %v1640_v49 = vld [vmem:[%s2448_s1 + $0x204] sm:$0xf] }
  0x43   :  { %725 = vmatpush.bf16.msrb.mxu1 %v1409_v29  ;;  %713 = vmatmul.bf16.vlgmr.msrb.gmra.mxu0 %v2182_v32  ;;  %v1237_v27 = vor.u32 %v1612_v20, %v1234_v21  ;;  %v1660_v29 = vld [vmem:[%s2448_s1 + $0x2a4] sm:$0xf]  ;;  %v1218_v48 = vld [vmem:[%s2448_s1 + $0x108] sm:$0xf0]  ;;  %v1681_v1 = vld [vmem:[%s2451_s3 + $0x38] sm:$0xff] }
  0x44   :  { %770 = vmatpush.bf16.msra.mxu0 %v1277_v25  ;;  %v1437_v25 = vor.u32 %v1662_v17, %v1434_v18  ;;  %v1429_v38 = vor.u32 %v1660_v29, %v1426_v30  ;;  %v1282_v56 = vld [vmem:[%s2448_s1 + $0x188] sm:$0xf0]  ;;  %v1672_v61 = vld [vmem:[%s2448_s1 + $0x304] sm:$0xf]  ;;  %v153_v8 = vld [vmem:[%s2452_s2] sm:$0x3] }
  0x45   :  { %764 = vmatpush.bf16.msra.mxu2 %v1157_v33  ;;  %752 = vmatmul.bf16.vlgmr.msrb.gmra.mxu3 %v1982_v58  ;;  %v1442_v58 = vld [vmem:[%s2448_s1 + $0x2c8] sm:$0xf0]  ;;  %v1610_v33 = vld [vmem:[%s2448_s1 + $0x114] sm:$0xf] }
  0x46   :  { %796 = vmatpush.bf16.msra.mxu3 %v1405_v26  ;;  %726 = vmatmul.bf16.vlgmr.msrb.gmra.mxu1 %v2193_v39  ;;  %v1445_v13 = vor.u32 %v1664_v6, %v1442_v58  ;;  %v1628_v26 = vld [vmem:[%s2448_s1 + $0x1a4] sm:$0xf]  ;;  %v1229_v41 = vor.u32 %v1610_v33, %v1226_v34  ;;  %v1410_v60 = vld [vmem:[%s2448_s1 + $0x288] sm:$0xf0] }
  0x47   :  { %783 = vmatpush.bf16.msra.mxu1 %v1341_v36  ;;  %v1354_v36 = vld [vmem:[%s2448_s1 + $0x218] sm:$0xf0]  ;;  %v1474_v62 = vld [vmem:[%s2448_s1 + $0x308] sm:$0xf0]  ;;  %v1674_v58 = vld [vmem:[%s2451_s3] sm:$0xff] }
  0x48   :  { %771 = vmatpush.bf16.msra.mxu0 %v1269_v40  ;;  %765 = vmatmul.bf16.vlgmr.msra.gmra.mxu2 %v2001_v3  ;;  %v1325_v3 = vor.u32 %v1634_v52, %v1322_v55  ;;  %v1626_v40 = vld [vmem:[%s2448_s1 + $0x194] sm:$0xf]  ;;  %v1357_v46 = vor.u32 %v1642_v35, %v1354_v36  ;;  %v1624_v55 = vld [vmem:[%s2448_s1 + $0x184] sm:$0xf] }
  0x49   :  { %809 = vmatpush.bf16.msrb.mxu2 %v1469_v37  ;;  %v1301_v37 = vor.u32 %v1628_v26, %v1298_v28  ;;  %v1285_v63 = vor.u32 %v1624_v55, %v1282_v56  ;;  %v1687_v28 = vld [vmem:[%s2451_s3 + $0x68] sm:$0xff] }
  0x4a   :  { %797 = vmatpush.bf16.msra.mxu3 %v1397_v44  ;;  %v1418_v44 = vld [vmem:[%s2448_s1 + $0x298] sm:$0xf0] }
  0x4b   :  { %784 = vmatpush.bf16.msra.mxu1 %v1333_v50  ;;  %v1346_v50 = vld [vmem:[%s2448_s1 + $0x208] sm:$0xf0]  ;;  %v1421_v52 = vor.u32 %v1658_v43, %v1418_v44  ;;  %v1682_v43 = vld [vmem:[%s2451_s3 + $0x40] sm:$0xff] }
  0x4c   :  { %772 = vmatpush.bf16.msra.mxu0 %v1261_v54  ;;  %v1221_v54 = vor.u32 %v1608_v47, %v1218_v48  ;;  %v1349_v57 = vor.u32 %v1640_v49, %v1346_v50  ;;  %v156_v47 = vperm.slane %v153_v8, 1 }
  0x4d   :  { %810 = vmatpush.bf16.msrb.mxu2 %v1461_v51  ;;  %v1293_v51 = vor.u32 %v1626_v40, %v1290_v42  ;;  %v1683_v42 = vld [vmem:[%s2451_s3 + $0x48] sm:$0xff] }
  0x4e   :  { %798 = vmatpush.bf16.msra.mxu3 %v1389_v59  ;;  %v1656_v59 = vld [vmem:[%s2448_s1 + $0x284] sm:$0xf] }
  0x4f   :  { %785 = vmatpush.bf16.msra.mxu1 %v1325_v3  ;;  %v1413_v3 = vor.u32 %v1656_v59, %v1410_v60 }
  0x50   :  { %773 = vmatpush.bf16.msra.mxu0 %v1253_v4  ;;  %v1675_v4 = vld [vmem:[%s2451_s3 + $0x8] sm:$0xff] }
  0x51   :  { %811 = vmatpush.bf16.msrb.mxu2 %v1453_v0  ;;  %v1477_v0 = vor.u32 %v1672_v61, %v1474_v62 }
  0x52   :  { %799 = vmatpush.bf16.msra.mxu3 %v1381_v7 }
  0x53   :  { %786 = vmatpush.bf16.msra.mxu1 %v1317_v12  ;;  %v155_v12 = vperm.slane %v153_v8, 0  ;;  %v1698_v8 = vld [vmem:[%s2450_s4] ss:$0 sm:$0xff] }
  0x54   :  { %774 = vmatpush.bf16.msra.mxu0 %v1245_v15 }
  0x55   :  { %812 = vmatpush.bf16.msrb.mxu2 %v1445_v13 }
  0x56   :  { %800 = vmatpush.bf16.msra.mxu3 %v1373_v19  ;;  %v1689_v19 = vld [vmem:[%s2451_s3 + $0x78] sm:$0xff] }
  0x57   :  { %787 = vmatpush.bf16.msra.mxu1 %v1309_v24  ;;  %v1688_v24 = vld [vmem:[%s2451_s3 + $0x70] sm:$0xff] }
  0x58   :  { %775 = vmatpush.bf16.msra.mxu0 %v1237_v27 }
  0x59   :  { %813 = vmatpush.bf16.msrb.mxu2 %v1437_v25 }
  0x5a   :  { %801 = vmatpush.bf16.msra.mxu3 %v1365_v31  ;;  %v1686_v31 = vld [vmem:[%s2451_s3 + $0x60] sm:$0xff] }
  0x5b   :  { %788 = vmatpush.bf16.msra.mxu1 %v1301_v37  ;;  %v1685_v37 = vld [vmem:[%s2451_s3 + $0x58] sm:$0xff] }
  0x5c   :  { %776 = vmatpush.bf16.msra.mxu0 %v1229_v41 }
  0x5d   :  { %814 = vmatpush.bf16.msrb.mxu2 %v1429_v38  ;;  %v1684_v38 = vld [vmem:[%s2451_s3 + $0x50] sm:$0xff] }
  0x5e   :  { %802 = vmatpush.bf16.msra.mxu3 %v1357_v46 }
  0x5f   :  { %789 = vmatpush.bf16.msra.mxu1 %v1293_v51 }
  0x60   :  { %777 = vmatpush.bf16.msra.mxu0 %v1221_v54 }
  0x61   :  { %815 = vmatpush.bf16.msrb.mxu2 %v1421_v52 }
  0x62   :  { %803 = vmatpush.bf16.msra.mxu3 %v1349_v57 }
  0x63   :  { %790 = vmatpush.bf16.msra.mxu1 %v1285_v63  ;;  %778 = vmatmul.bf16.vlgmr.msra.gmra.mxu0 %v1980_v53  ;;  %v1680_v53 = vld [vmem:[%s2451_s3 + $0x30] sm:$0xff] }
  0x65   :  { %804 = vmatmul.bf16.vlgmr.msra.gmra.mxu3 %v2182_v32  ;;  %816 = vmatpush.bf16.msrb.mxu2 %v1413_v3  ;;  %v1679_v32 = vld [vmem:[%s2451_s3 + $0x28] sm:$0xff] }
  0x66   :  { %791 = vmatmul.bf16.vlgmr.msra.gmra.mxu1 %v1999_v2  ;;  %v1678_v2 = vld [vmem:[%s2451_s3 + $0x20] sm:$0xff]  ;;  %984 = vmatpush.bf16.msrb.mxu3 %v1689_v19 }
  0x67   :  { %971 = vmatpush.bf16.msrb.mxu1 %v1681_v1 }
  0x68   :  { %817 = vmatmul.bf16.vlgmr.msrb.gmra.mxu2 %v2193_v39  ;;  %v1676_v39 = vld [vmem:[%s2451_s3 + $0x10] sm:$0xff] }
  0x69   :  { %829 = vmatpush.bf16.msra.mxu2 %v1477_v0 }
  0x6a   :  { %985 = vmatpush.bf16.msrb.mxu3 %v1688_v24 }
  0x6b   :  { %972 = vmatpush.bf16.msrb.mxu1 %v1680_v53  ;;  %v1697_v53 = vld [vmem:[%s2454_s5 + $0x38] sm:$0xff] }
  0x6c   :  { %1067 = vmatpush.bf16.msrb.mxu0 %v1697_v53 }
  0x6e   :  { %986 = vmatpush.bf16.msrb.mxu3 %v1687_v28 }
  0x6f   :  { %973 = vmatpush.bf16.msrb.mxu1 %v1679_v32  ;;  %v1696_v32 = vld [vmem:[%s2454_s5 + $0x30] sm:$0xff] }
  0x70   :  { %1068 = vmatpush.bf16.msrb.mxu0 %v1696_v32 }
  0x72   :  { %987 = vmatpush.bf16.msrb.mxu3 %v1686_v31 }
  0x73   :  { %974 = vmatpush.bf16.msrb.mxu1 %v1678_v2  ;;  %v1695_v2 = vld [vmem:[%s2454_s5 + $0x28] sm:$0xff] }
  0x74   :  { %1069 = vmatpush.bf16.msrb.mxu0 %v1695_v2 }
  0x76   :  { %988 = vmatpush.bf16.msrb.mxu3 %v1685_v37 }
  0x78   :  { %1479 = vmatmul.msk.bf16.vlgmr.msra.gmra.mxu2 %vm649_vm0, %v2088_v45  ;;  %v1677_v45 = vld [vmem:[%s2451_s3 + $0x18] sm:$0xff] }
  0x79   :  { %975 = vmatpush.bf16.msrb.mxu1 %v1677_v45  ;;  %v1694_v45 = vld [vmem:[%s2454_s5 + $0x20] sm:$0xff] }
  0x7a   :  { %989 = vmatpush.bf16.msrb.mxu3 %v1684_v38  ;;  %1070 = vmatpush.bf16.msrb.mxu0 %v1694_v45 }
  0x7d   :  { %976 = vmatpush.bf16.msrb.mxu1 %v1676_v39  ;;  %v1693_v39 = vld [vmem:[%s2454_s5 + $0x18] sm:$0xff] }
  0x7e   :  { %990 = vmatpush.bf16.msrb.mxu3 %v1683_v42  ;;  %1071 = vmatpush.bf16.msrb.mxu0 %v1693_v39 }
  0x81   :  { %977 = vmatpush.bf16.msrb.mxu1 %v1675_v4  ;;  %v1692_v4 = vld [vmem:[%s2454_s5 + $0x10] sm:$0xff] }
  0x82   :  { %991 = vmatpush.bf16.msrb.mxu3 %v1682_v43  ;;  %1072 = vmatpush.bf16.msrb.mxu0 %v1692_v4 }
  0x85   :  { %978 = vmatpush.bf16.msrb.mxu1 %v1674_v58  ;;  %v1691_v58 = vld [vmem:[%s2454_s5 + $0x8] sm:$0xff] }
  0x86   :  { %1073 = vmatpush.bf16.msrb.mxu0 %v1691_v58 }
  0xa0   :  { %v662_v5 = vpop.f32.mrf.mxu0 }
  0xa1   :  { %v663_v14 = vadd.f32 %v662_v5, %v155_v12 }
  0xa3   :  { %v675_v6 = vpop.f32.mrf.mxu1 }
  0xa4   :  { %v676_v16 = vadd.f32 %v675_v6, %v663_v14 }
  0xa7   :  { %v688_v7 = vpop.f32.mrf.mxu2 }
  0xa8   :  { %v701_v9 = vpop.f32.mrf.mxu3  ;;  %v664_v10 = vpop.f32.mrf.mxu0  ;;  %v689_v18 = vadd.f32 %v688_v7, %v676_v16  ;;  %v1690_v7 = vld [vmem:[%s2454_s5] sm:$0xff] }
  0xa9   :  { %1074 = vmatpush.bf16.msrb.mxu0 %v1690_v7 }
  0xaa   :  { %v702_v20 = vadd.f32 %v701_v9, %v689_v18 }
  0xab   :  { %v677_v11 = vpop.f32.mrf.mxu1 }
  0xaf   :  { %v690_v13 = vpop.f32.mrf.mxu2 }
  0xb0   :  { %v703_v15 = vpop.f32.mrf.mxu3 }
  0xb1   :  { %v1699_v15 = vld [vmem:[%s2453_s6] ss:$0 sm:$0xff] }
  0xb7   :  { %v740_v17 = vpop.f32.mrf.mxu2 }
  0xbf   :  { %v742_v23 = vpop.f32.mrf.mxu2 }
  0xc0   :  { %v714_v21 = vpop.f32.mrf.mxu0 }
  0xc1   :  { %v715_v22 = vadd.f32 %v714_v21, %v702_v20 }
  0xc3   :  { %v727_v25 = vpop.f32.mrf.mxu1 }
  0xc4   :  { %v728_v26 = vadd.f32 %v727_v25, %v715_v22 }
  0xc6   :  { %v741_v27 = vadd.f32 %v740_v17, %v728_v26 }
  0xc8   :  { %v835_v29 = vmax.f32 %v741_v27, 0.0  ;;  %v716_v30 = vpop.f32.mrf.mxu0  ;;  %v753_v35 = vpop.f32.mrf.mxu3 }
  0xc9   :  { %v754_v50 = vadd.f32 %v753_v35, %v156_v47 }
  0xca   :  { %v837_v33 = vpack.c.bf16 %v835_v29, %v835_v29 }
  0xcb   :  { %v766_v34 = vpop.f32.mrf.mxu2  ;;  %v729_v36 = vpop.f32.mrf.mxu1 }
  0xcc   :  { %979 = vmatmul.bf16.vlgmr.msrb.gmra.mxu1 %v837_v33  ;;  %v767_v54 = vadd.f32 %v766_v34, %v754_v50 }
  0xd0   :  { %v755_v41 = vpop.f32.mrf.mxu3 }
  0xd3   :  { %v768_v40 = vpop.f32.mrf.mxu2 }
  0xe0   :  { %v779_v44 = vpop.f32.mrf.mxu0 }
  0xe1   :  { %v780_v55 = vadd.f32 %v779_v44, %v767_v54 }
  0xe3   :  { %v792_v46 = vpop.f32.mrf.mxu1 }
  0xe4   :  { %v793_v59 = vadd.f32 %v792_v46, %v780_v55 }
  0xe8   :  { %v805_v48 = vpop.f32.mrf.mxu3  ;;  %v781_v49 = vpop.f32.mrf.mxu0 }
  0xe9   :  { %v806_v60 = vadd.f32 %v805_v48, %v793_v59 }
  0xeb   :  { %v818_v51 = vpop.f32.mrf.mxu2  ;;  %v794_v52 = vpop.f32.mrf.mxu1 }
  0xec   :  { %v819_v61 = vadd.f32 %v818_v51, %v806_v60 }
  0xf0   :  { %v807_v56 = vpop.f32.mrf.mxu3 }
  0xf3   :  { %v820_v57 = vpop.f32.mrf.mxu2 }
  0xfb   :  { %v831_v62 = vpop.f32.mrf.mxu2 }
  0xfc   :  { %v832_v63 = vadd.f32 %v831_v62, %v819_v61 }
  0xfe   :  { %v836_v3 = vmax.f32 %v832_v63, 0.0 }
 0x100   :  { %v838_v0 = vpack.c.bf16 %v836_v3, %v836_v3 }
 0x102   :  { %992 = vmatmul.bf16.vlgmr.msrb.gmra.mxu3 %v838_v0 }
 0x103   :  { %v833_v1 = vpop.f32.mrf.mxu2 }
 0x149   :  { %v980_v5 = vpop.f32.mrf.mxu1 }
 0x14a   :  { %v981_v9 = vadd.f32 %v1698_v8, %v980_v5 }
 0x151   :  { %v982_v6 = vpop.f32.mrf.mxu1 }
 0x185   :  { %v993_v10 = vpop.f32.mrf.mxu3 }
 0x186   :  { %v994_v11 = vadd.f32 %v993_v10, %v981_v9 }
 0x188   :  { %v997_v12 = vmax.f32 %v994_v11, 0.0 }
 0x18a   :  { %v998_v13 = vpack.c.bf16 %v997_v12, %v997_v12 }
 0x18c   :  { %1075 = vmatmul.bf16.vlgmr.msrb.gmra.mxu0 %v998_v13 }
 0x18d   :  { %v995_v14 = vpop.f32.mrf.mxu3 }
 0x209   :  { %v1076_v16 = vpop.f32.mrf.mxu0 }
 0x20a   :  { %v1077_v17 = vadd.f32 %v1699_v15, %v1076_v16 }
 0x20c   :  { %v1080_v18 = vpack.c.bf16 %v1077_v17, %v1077_v17 }
 0x20e   :  { %1081 = vst [vmem:[%s2455_s7] sm:$0x1] %v1080_v18 }
 0x211   :  { %v1078_v19 = vpop.f32.mrf.mxu0 }

</bundles_post_ra>
